<compile_context>
chip_gen: v5e
topology: v5e:2x2
jax: 0.10.0
libtpu: 0.0.40
codegen_flags: <defaults>
</compile_context>

<pallas_src>
import math
import numpy as np
import jax
import jax.numpy as jnp
from jax.experimental import pallas as pl
from jax.experimental.pallas import tpu as pltpu


# ----------------------------- schedule (host-side, same as torch buffers) -----------------------------
def cosine_beta_schedule(timesteps: int, s: float = 0.008) -> np.ndarray:
    steps = timesteps + 1
    x = np.linspace(0, steps, steps)
    alphas_cumprod = np.cos(((x / steps) + s) / (1 + s) * np.pi * 0.5) ** 2
    alphas_cumprod = alphas_cumprod / alphas_cumprod[0]
    betas = 1.0 - (alphas_cumprod[1:] / alphas_cumprod[:-1])
    return np.clip(betas, 0.0, 0.999)


# ----------------------------- fused Pallas kernel (factory bakes constants) -----------------------------
def _make_fused_sample_kernel(a_t, c_t, nsc_t, batch, n_timesteps):
    """Build the fused p_sample_loop kernel.

    Per-step scalar coefficients (baked as compile-time constants):
      a_t[t]   = posterior_mean_coef1[t]*sqrt_recip_alphas_cumprod[t] + posterior_mean_coef2[t]
      c_t[t]   = posterior_mean_coef1[t]*sqrt_recipm1_alphas_cumprod[t]
      nsc_t[t] = nonzero_mask[t] * 0.5 * exp(0.5 * posterior_log_variance_clipped[t])

    Kernel operands (all VMEM, full-array blocks):
      cond_ref  : f32[N, D]    rows [0, B) hold the conditioning state (horizon-major layout)
      xinit_ref : f32[N, D]    0.5 * N(0, I) initial trajectory
      noise_ref : f32[T-1,N,D] per-step Gaussian noise (step t uses row t-1; t == 0 needs none)
      tbias_ref : f32[T, HID]  precomputed temb(t) @ W1t + b1
      mbias_ref : f32[T, D]    precomputed -c_t * b2
      w1x_ref   : f32[D, HID]
      w2_ref    : f32[HID, D]
      o_ref     : f32[N, D]    output trajectory (written once)
    """
    T = int(n_timesteps)
    B = int(batch)

    def kernel(cond_ref, xinit_ref, noise_ref, tbias_ref, mbias_ref,
               w1x_ref, w2_ref, o_ref):
        N, D = o_ref.shape

        # ---- loop-invariant loads / broadcasts, hoisted once ----
        w1x = w1x_ref[...]                     # (D, HID)
        w2 = w2_ref[...]                       # (HID, D)
        tb = tbias_ref[...]                    # (T, HID)
        mb = mbias_ref[...]                    # (T, D)
        cond_full = cond_ref[...]              # (N, D)
        row = jax.lax.broadcasted_iota(jnp.int32, (N, 1), 0)
        is_cond = jnp.broadcast_to(row < B, (N, D))   # h == 0 rows are the first B rows

        def condition(x):
            # apply_conditioning(x, cond, action_dim=0): overwrite horizon step 0 of every batch
            return jnp.where(is_cond, cond_full, x)

        # x_T = 0.5 * N(0, I) (scaled in wrapper), then condition.
        x = condition(xinit_ref[...])

        # Reverse diffusion, statically unrolled (T is a small compile-time constant).
        # The trajectory x stays in vregs for all steps; o_ref is written once at the end.
        # TODO(synk): for realistic T (100-1000) switch this unroll to lax.fori_loop with a
        #             dynamic pl.ds slice of tbias/mbias/noise instead of baked constants.
        for t in range(T - 1, -1, -1):
            # epsilon(x, t) = relu(x @ W1x + tbias[t]) @ W2   (+ b2, folded into mbias[t])
            h = jnp.dot(x, w1x, preferred_element_type=jnp.float32) + tb[t:t + 1, :]
            h = jnp.maximum(h, 0.0)
            hw2 = jnp.dot(h, w2, preferred_element_type=jnp.float32)
            # folded p_sample update: x <- a_t*x - c_t*eps + mbias_t (+ nsc_t * noise_t)
            x = a_t[t] * x - c_t[t] * hw2 + mb[t:t + 1, :]
            if t > 0:                          # nsc_t[0] == 0 -> statically skip noise at t == 0
                x = x + nsc_t[t] * noise_ref[t - 1, :, :]
            x = condition(x)

        o_ref[...] = x

    return kernel


# ----------------------------- module -----------------------------
class GaussianInvDynDiffusionPallas:
    """Pallas/TPU forward pass: forward == conditional_sample == p_sample_loop."""

    def __init__(self, horizon, obs_dim, action_dim, n_timesteps=8, hidden_dim=32,
                 temb_dim=16, returns_condition=False, predict_epsilon=True,
                 condition_guidance_w=0.1, clip_denoised=False, seed=42):
        assert not returns_condition, "returns_condition=False path implemented"
        assert predict_epsilon and not clip_denoised
        self.horizon = horizon
        self.obs_dim = obs_dim
        self.action_dim = action_dim
        self.n_timesteps = int(n_timesteps)
        self.hidden_dim = hidden_dim
        self.temb_dim = temb_dim

        # ---- diffusion schedule, folded into 3 scalars per timestep ----
        betas = cosine_beta_schedule(self.n_timesteps)
        alphas = 1.0 - betas
        acp = np.cumprod(alphas, axis=0)
        acp_prev = np.concatenate([np.ones(1), acp[:-1]])
        sqrt_recip = np.sqrt(1.0 / acp)
        sqrt_recipm1 = np.sqrt(1.0 / acp - 1.0)
        post_var = betas * (1.0 - acp_prev) / (1.0 - acp)
        post_logvar = np.log(np.clip(post_var, 1e-20, None))
        pm_coef1 = betas * np.sqrt(acp_prev) / (1.0 - acp)
        pm_coef2 = (1.0 - acp_prev) * np.sqrt(alphas) / (1.0 - acp)
        nonzero = np.ones(self.n_timesteps)
        nonzero[0] = 0.0                                   # no noise at t == 0
        a_np = pm_coef1 * sqrt_recip + pm_coef2            # folds predict_start + q_posterior
        c_np = pm_coef1 * sqrt_recipm1
        nsc_np = nonzero * 0.5 * np.exp(0.5 * post_logvar)  # folds 0.5*randn and exp(0.5*logvar)
        self._a = [float(v) for v in a_np]
        self._c = [float(v) for v in c_np]
        self._nsc = [float(v) for v in nsc_np]

        # TODO(synk): reference `self.model` is a DiffusionUNet1d (temporal U-Net); here it is a
        # small MLP epsilon-predictor (sinusoidal time embedding + 2-layer MLP) in Pallas.
        k1, k2, k3 = jax.random.split(jax.random.PRNGKey(seed), 3)
        self.w1x = 0.1 * jax.random.normal(k1, (obs_dim, hidden_dim), jnp.float32)
        w1t = 0.1 * jax.random.normal(k2, (temb_dim, hidden_dim), jnp.float32)
        b1 = jnp.zeros((1, hidden_dim), jnp.float32)
        self.w2 = 0.1 * jax.random.normal(k3, (hidden_dim, obs_dim), jnp.float32)
        b2 = np.zeros((1, obs_dim), np.float32)

        # Fold the time-embedding branch into a per-timestep bias: tbias[t] = temb(t) @ W1t + b1
        half = temb_dim // 2
        freqs = np.exp(-math.log(10000.0) * np.arange(half, dtype=np.float64) / max(half - 1, 1))
        ang = np.arange(self.n_timesteps, dtype=np.float64)[:, None] * freqs[None, :]
        temb_all = np.concatenate([np.sin(ang), np.cos(ang)], axis=1).astype(np.float32)
        self.tbias = jnp.asarray(temb_all) @ w1t + b1                  # (T, hidden)
        # Fold the second-layer bias into the per-step mean update: mbias[t] = -c_t * b2
        self.mbias = jnp.asarray(-c_np[:, None].astype(np.float32) * b2)   # (T, obs_dim)

        # inv_model (2*obs_dim -> hidden -> hidden -> action_dim) exists in the reference
        # __init__ but is never used by forward(); not materialized here.

        # Explicit VMEM budget only matters when actually compiling for TPU.
        self._compiler_params = None
        try:
            if jax.devices()[0].platform == "tpu":
                self._compiler_params = pltpu.CompilerParams(vmem_limit_bytes=32 * 1024 * 1024)
        except Exception:
            self._compiler_params = None

    # --- single fused pallas_call: whole sampling loop ---
    def _sample(self, rng, cond_state, horizon):
        B, D = cond_state.shape
        H = int(horizon)
        T = self.n_timesteps
        N = H * B                                # horizon-major flatten: row = h*B + b

        # All Gaussian noise drawn once up front (deterministic, host-visible PRNG).
        k_init, k_noise = jax.random.split(rng)
        x_init = 0.5 * jax.random.normal(k_init, (N, D), dtype=jnp.float32)
        n_noise = max(T - 1, 1)
        noise = jax.random.normal(k_noise, (n_noise, N, D), dtype=jnp.float32)

        # Conditioning state placed in the first B rows (h == 0 for every batch element).
        cond_full = jnp.zeros((N, D), jnp.float32).at[:B, :].set(cond_state)

        kernel = _make_fused_sample_kernel(self._a, self._c, self._nsc, B, T)
        vmem = pl.BlockSpec(memory_space=pltpu.MemorySpace.VMEM)
        # TODO(synk): on v7x (2 TensorCores) a grid=(B,) batch-parallel variant with
        #             dimension_semantics=("parallel",) would halve wall time for B>=2; kept
        #             grid-less here so v5e/v6e (1 TC) do not pay B serial grid iterations.
        out_flat = pl.pallas_call(
            kernel,
            out_shape=jax.ShapeDtypeStruct((N, D), jnp.float32),
            in_specs=[vmem] * 7,
            out_specs=vmem,
            compiler_params=self._compiler_params,
        )(cond_full, x_init, noise, self.tbias, self.mbias, self.w1x, self.w2)

        # horizon-major (H, B, D) -> (B, H, D)
        return out_flat.reshape(H, B, D).transpose(1, 0, 2)

    # --- diffusion sampling loop (forward pass) ---
    def p_sample_loop(self, shape, cond, rng):
        B, H, D = shape
        return self._sample(rng, cond[0], H)

    def conditional_sample(self, cond, horizon=None, rng=None):
        batch_size = cond[0].shape[0]
        horizon = horizon or self.horizon
        shape = (batch_size, horizon, self.obs_dim)
        return self.p_sample_loop(shape, cond, rng)

    def forward(self, cond, rng=None):
        if rng is None:
            rng = jax.random.PRNGKey(0)
        return self.conditional_sample(cond, rng=rng)


# ----------------------------- demo -----------------------------
if __name__ == "__main__":
    B, H, D, A = 2, 8, 16, 4          # batch, horizon, obs_dim, action_dim
    T, HIDDEN = 8, 32                 # n_timesteps, hidden_dim

    model = GaussianInvDynDiffusionPallas(
        horizon=H, obs_dim=D, action_dim=A, n_timesteps=T, hidden_dim=HIDDEN)

    key = jax.random.PRNGKey(0)
    k_cond, k_samp = jax.random.split(key)
    cond_state = jax.random.normal(k_cond, (B, D), dtype=jnp.float32)
    cond = {0: cond_state}            # [ (time=0, state) ] conditioning

    x = model.forward(cond, rng=k_samp)
    x = jax.block_until_ready(x)
    assert x.shape == (B, H, D) and x.dtype == jnp.float32
    assert bool(jnp.allclose(x[:, 0, :], cond_state))   # conditioning row preserved
    assert bool(jnp.all(jnp.isfinite(x)))
    print("KERNEL_OK")
</pallas_src>

<mosaic_0001>
module attributes {stable_mosaic.version = 11 : i64} {
  func.func @kernel(%arg0: memref<16x16xf32, #tpu.memory_space<vmem>>, %arg1: memref<16x16xf32, #tpu.memory_space<vmem>>, %arg2: memref<7x16x16xf32, #tpu.memory_space<vmem>>, %arg3: memref<8x32xf32, #tpu.memory_space<vmem>>, %arg4: memref<8x16xf32, #tpu.memory_space<vmem>>, %arg5: memref<16x32xf32, #tpu.memory_space<vmem>>, %arg6: memref<32x16xf32, #tpu.memory_space<vmem>>, %arg7: memref<16x16xf32, #tpu.memory_space<vmem>>) attributes {dimension_semantics = [], scalar_prefetch = 0 : i64, scratch_operands = 0 : i64, tpu.core_type = #tpu.core_type<tc>} {
    %c0 = arith.constant 0 : index
    %c0_0 = arith.constant 0 : index
    %0 = vector.load %arg5[%c0, %c0_0] : memref<16x32xf32, #tpu.memory_space<vmem>>, vector<16x32xf32>
    %c0_1 = arith.constant 0 : index
    %c0_2 = arith.constant 0 : index
    %1 = vector.load %arg6[%c0_1, %c0_2] : memref<32x16xf32, #tpu.memory_space<vmem>>, vector<32x16xf32>
    %c0_3 = arith.constant 0 : index
    %c0_4 = arith.constant 0 : index
    %2 = vector.load %arg3[%c0_3, %c0_4] : memref<8x32xf32, #tpu.memory_space<vmem>>, vector<8x32xf32>
    %c0_5 = arith.constant 0 : index
    %c0_6 = arith.constant 0 : index
    %3 = vector.load %arg4[%c0_5, %c0_6] : memref<8x16xf32, #tpu.memory_space<vmem>>, vector<8x16xf32>
    %c0_7 = arith.constant 0 : index
    %c0_8 = arith.constant 0 : index
    %4 = vector.load %arg0[%c0_7, %c0_8] : memref<16x16xf32, #tpu.memory_space<vmem>>, vector<16x16xf32>
    %5 = tpu.iota {dimensions = array<i32: 0>} : vector<16x1xi32>
    %c2_i32 = arith.constant 2 : i32
    %6 = vector.broadcast %c2_i32 : i32 to vector<16x1xi32>
    %7 = arith.cmpi slt, %5, %6 : vector<16x1xi32>
    %8 = vector.shape_cast %7 : vector<16x1xi1> to vector<16x1xi1>
    %9 = vector.broadcast %8 : vector<16x1xi1> to vector<16x16xi1>
    %c0_9 = arith.constant 0 : index
    %c0_10 = arith.constant 0 : index
    %10 = vector.load %arg1[%c0_9, %c0_10] : memref<16x16xf32, #tpu.memory_space<vmem>>, vector<16x16xf32>
    %11 = arith.select %9, %4, %10 : vector<16x16xi1>, vector<16x16xf32>
    %cst = arith.constant dense<0.000000e+00> : vector<16x32xf32>
    %12 = tpu.matmul %11, %0, %cst {dimension_numbers = #tpu.dot_dimension_numbers<[1], [0], [0], [1], [0, 0, 1, 1], [], []>} : vector<16x16xf32>, vector<16x32xf32>, vector<16x32xf32> -> vector<16x32xf32>
    %13 = vector.extract_strided_slice %2 {offsets = [7, 0], sizes = [1, 32], strides = [1, 1]} : vector<8x32xf32> to vector<1x32xf32>
    %14 = vector.broadcast %13 : vector<1x32xf32> to vector<16x32xf32>
    %15 = arith.addf %12, %14 : vector<16x32xf32>
    %cst_11 = arith.constant 0.000000e+00 : f32
    %16 = vector.broadcast %cst_11 : f32 to vector<16x32xf32>
    %17 = arith.maximumf %15, %16 : vector<16x32xf32>
    %cst_12 = arith.constant dense<0.000000e+00> : vector<16x16xf32>
    %18 = tpu.matmul %17, %1, %cst_12 {dimension_numbers = #tpu.dot_dimension_numbers<[1], [0], [0], [1], [0, 0, 1, 1], [], []>} : vector<16x32xf32>, vector<32x16xf32>, vector<16x16xf32> -> vector<16x16xf32>
    %cst_13 = arith.constant 31.622776 : f32
    %19 = vector.broadcast %cst_13 : f32 to vector<16x16xf32>
    %20 = arith.mulf %19, %11 : vector<16x16xf32>
    %cst_14 = arith.constant 31.5917454 : f32
    %21 = vector.broadcast %cst_14 : f32 to vector<16x16xf32>
    %22 = arith.mulf %21, %18 : vector<16x16xf32>
    %23 = arith.subf %20, %22 : vector<16x16xf32>
    %24 = vector.extract_strided_slice %3 {offsets = [7, 0], sizes = [1, 16], strides = [1, 1]} : vector<8x16xf32> to vector<1x16xf32>
    %25 = vector.broadcast %24 : vector<1x16xf32> to vector<16x16xf32>
    %26 = arith.addf %23, %25 : vector<16x16xf32>
    %c6 = arith.constant 6 : index
    %c0_15 = arith.constant 0 : index
    %c0_16 = arith.constant 0 : index
    %27 = vector.load %arg2[%c6, %c0_15, %c0_16] : memref<7x16x16xf32, #tpu.memory_space<vmem>>, vector<1x16x16xf32>
    %28 = vector.shape_cast %27 : vector<1x16x16xf32> to vector<16x16xf32>
    %cst_17 = arith.constant 0.490306437 : f32
    %29 = vector.broadcast %cst_17 : f32 to vector<16x16xf32>
    %30 = arith.mulf %29, %28 : vector<16x16xf32>
    %31 = arith.addf %26, %30 : vector<16x16xf32>
    %32 = arith.select %9, %4, %31 : vector<16x16xi1>, vector<16x16xf32>
    %cst_18 = arith.constant dense<0.000000e+00> : vector<16x32xf32>
    %33 = tpu.matmul %32, %0, %cst_18 {dimension_numbers = #tpu.dot_dimension_numbers<[1], [0], [0], [1], [0, 0, 1, 1], [], []>} : vector<16x16xf32>, vector<16x32xf32>, vector<16x32xf32> -> vector<16x32xf32>
    %34 = vector.extract_strided_slice %2 {offsets = [6, 0], sizes = [1, 32], strides = [1, 1]} : vector<8x32xf32> to vector<1x32xf32>
    %35 = vector.broadcast %34 : vector<1x32xf32> to vector<16x32xf32>
    %36 = arith.addf %33, %35 : vector<16x32xf32>
    %cst_19 = arith.constant 0.000000e+00 : f32
    %37 = vector.broadcast %cst_19 : f32 to vector<16x32xf32>
    %38 = arith.maximumf %36, %37 : vector<16x32xf32>
    %cst_20 = arith.constant dense<0.000000e+00> : vector<16x16xf32>
    %39 = tpu.matmul %38, %1, %cst_20 {dimension_numbers = #tpu.dot_dimension_numbers<[1], [0], [0], [1], [0, 0, 1, 1], [], []>} : vector<16x32xf32>, vector<32x16xf32>, vector<16x16xf32> -> vector<16x16xf32>
    %cst_21 = arith.constant 1.9621762 : f32
    %40 = vector.broadcast %cst_21 : f32 to vector<16x16xf32>
    %41 = arith.mulf %40, %32 : vector<16x16xf32>
    %cst_22 = arith.constant 1.48054218 : f32
    %42 = vector.broadcast %cst_22 : f32 to vector<16x16xf32>
    %43 = arith.mulf %42, %39 : vector<16x16xf32>
    %44 = arith.subf %41, %43 : vector<16x16xf32>
    %45 = vector.extract_strided_slice %3 {offsets = [6, 0], sizes = [1, 16], strides = [1, 1]} : vector<8x16xf32> to vector<1x16xf32>
    %46 = vector.broadcast %45 : vector<1x16xf32> to vector<16x16xf32>
    %47 = arith.addf %44, %46 : vector<16x16xf32>
    %c5 = arith.constant 5 : index
    %c0_23 = arith.constant 0 : index
    %c0_24 = arith.constant 0 : index
    %48 = vector.load %arg2[%c5, %c0_23, %c0_24] : memref<7x16x16xf32, #tpu.memory_space<vmem>>, vector<1x16x16xf32>
    %49 = vector.shape_cast %48 : vector<1x16x16xf32> to vector<16x16xf32>
    %cst_25 = arith.constant 0.405626118 : f32
    %50 = vector.broadcast %cst_25 : f32 to vector<16x16xf32>
    %51 = arith.mulf %50, %49 : vector<16x16xf32>
    %52 = arith.addf %47, %51 : vector<16x16xf32>
    %53 = arith.select %9, %4, %52 : vector<16x16xi1>, vector<16x16xf32>
    %cst_26 = arith.constant dense<0.000000e+00> : vector<16x32xf32>
    %54 = tpu.matmul %53, %0, %cst_26 {dimension_numbers = #tpu.dot_dimension_numbers<[1], [0], [0], [1], [0, 0, 1, 1], [], []>} : vector<16x16xf32>, vector<16x32xf32>, vector<16x32xf32> -> vector<16x32xf32>
    %55 = vector.extract_strided_slice %2 {offsets = [5, 0], sizes = [1, 32], strides = [1, 1]} : vector<8x32xf32> to vector<1x32xf32>
    %56 = vector.broadcast %55 : vector<1x32xf32> to vector<16x32xf32>
    %57 = arith.addf %54, %56 : vector<16x32xf32>
    %cst_27 = arith.constant 0.000000e+00 : f32
    %58 = vector.broadcast %cst_27 : f32 to vector<16x32xf32>
    %59 = arith.maximumf %57, %58 : vector<16x32xf32>
    %cst_28 = arith.constant dense<0.000000e+00> : vector<16x16xf32>
    %60 = tpu.matmul %59, %1, %cst_28 {dimension_numbers = #tpu.dot_dimension_numbers<[1], [0], [0], [1], [0, 0, 1, 1], [], []>} : vector<16x32xf32>, vector<32x16xf32>, vector<16x16xf32> -> vector<16x16xf32>
    %cst_29 = arith.constant 1.45253801 : f32
    %61 = vector.broadcast %cst_29 : f32 to vector<16x16xf32>
    %62 = arith.mulf %61, %53 : vector<16x16xf32>
    %cst_30 = arith.constant 0.825991213 : f32
    %63 = vector.broadcast %cst_30 : f32 to vector<16x16xf32>
    %64 = arith.mulf %63, %60 : vector<16x16xf32>
    %65 = arith.subf %62, %64 : vector<16x16xf32>
    %66 = vector.extract_strided_slice %3 {offsets = [5, 0], sizes = [1, 16], strides = [1, 1]} : vector<8x16xf32> to vector<1x16xf32>
    %67 = vector.broadcast %66 : vector<1x16xf32> to vector<16x16xf32>
    %68 = arith.addf %65, %67 : vector<16x16xf32>
    %c4 = arith.constant 4 : index
    %c0_31 = arith.constant 0 : index
    %c0_32 = arith.constant 0 : index
    %69 = vector.load %arg2[%c4, %c0_31, %c0_32] : memref<7x16x16xf32, #tpu.memory_space<vmem>>, vector<1x16x16xf32>
    %70 = vector.shape_cast %69 : vector<1x16x16xf32> to vector<16x16xf32>
    %cst_33 = arith.constant 0.326957583 : f32
    %71 = vector.broadcast %cst_33 : f32 to vector<16x16xf32>
    %72 = arith.mulf %71, %70 : vector<16x16xf32>
    %73 = arith.addf %68, %72 : vector<16x16xf32>
    %74 = arith.select %9, %4, %73 : vector<16x16xi1>, vector<16x16xf32>
    %cst_34 = arith.constant dense<0.000000e+00> : vector<16x32xf32>
    %75 = tpu.matmul %74, %0, %cst_34 {dimension_numbers = #tpu.dot_dimension_numbers<[1], [0], [0], [1], [0, 0, 1, 1], [], []>} : vector<16x16xf32>, vector<16x32xf32>, vector<16x32xf32> -> vector<16x32xf32>
    %76 = vector.extract_strided_slice %2 {offsets = [4, 0], sizes = [1, 32], strides = [1, 1]} : vector<8x32xf32> to vector<1x32xf32>
    %77 = vector.broadcast %76 : vector<1x32xf32> to vector<16x32xf32>
    %78 = arith.addf %75, %77 : vector<16x32xf32>
    %cst_35 = arith.constant 0.000000e+00 : f32
    %79 = vector.broadcast %cst_35 : f32 to vector<16x32xf32>
    %80 = arith.maximumf %78, %79 : vector<16x32xf32>
    %cst_36 = arith.constant dense<0.000000e+00> : vector<16x16xf32>
    %81 = tpu.matmul %80, %1, %cst_36 {dimension_numbers = #tpu.dot_dimension_numbers<[1], [0], [0], [1], [0, 0, 1, 1], [], []>} : vector<16x32xf32>, vector<32x16xf32>, vector<16x16xf32> -> vector<16x16xf32>
    %cst_37 = arith.constant 1.27372611 : f32
    %82 = vector.broadcast %cst_37 : f32 to vector<16x16xf32>
    %83 = arith.mulf %82, %74 : vector<16x16xf32>
    %cst_38 = arith.constant 0.585864067 : f32
    %84 = vector.broadcast %cst_38 : f32 to vector<16x16xf32>
    %85 = arith.mulf %84, %81 : vector<16x16xf32>
    %86 = arith.subf %83, %85 : vector<16x16xf32>
    %87 = vector.extract_strided_slice %3 {offsets = [4, 0], sizes = [1, 16], strides = [1, 1]} : vector<8x16xf32> to vector<1x16xf32>
    %88 = vector.broadcast %87 : vector<1x16xf32> to vector<16x16xf32>
    %89 = arith.addf %86, %88 : vector<16x16xf32>
    %c3 = arith.constant 3 : index
    %c0_39 = arith.constant 0 : index
    %c0_40 = arith.constant 0 : index
    %90 = vector.load %arg2[%c3, %c0_39, %c0_40] : memref<7x16x16xf32, #tpu.memory_space<vmem>>, vector<1x16x16xf32>
    %91 = vector.shape_cast %90 : vector<1x16x16xf32> to vector<16x16xf32>
    %cst_41 = arith.constant 0.264169157 : f32
    %92 = vector.broadcast %cst_41 : f32 to vector<16x16xf32>
    %93 = arith.mulf %92, %91 : vector<16x16xf32>
    %94 = arith.addf %89, %93 : vector<16x16xf32>
    %95 = arith.select %9, %4, %94 : vector<16x16xi1>, vector<16x16xf32>
    %cst_42 = arith.constant dense<0.000000e+00> : vector<16x32xf32>
    %96 = tpu.matmul %95, %0, %cst_42 {dimension_numbers = #tpu.dot_dimension_numbers<[1], [0], [0], [1], [0, 0, 1, 1], [], []>} : vector<16x16xf32>, vector<16x32xf32>, vector<16x32xf32> -> vector<16x32xf32>
    %97 = vector.extract_strided_slice %2 {offsets = [3, 0], sizes = [1, 32], strides = [1, 1]} : vector<8x32xf32> to vector<1x32xf32>
    %98 = vector.broadcast %97 : vector<1x32xf32> to vector<16x32xf32>
    %99 = arith.addf %96, %98 : vector<16x32xf32>
    %cst_43 = arith.constant 0.000000e+00 : f32
    %100 = vector.broadcast %cst_43 : f32 to vector<16x32xf32>
    %101 = arith.maximumf %99, %100 : vector<16x32xf32>
    %cst_44 = arith.constant dense<0.000000e+00> : vector<16x16xf32>
    %102 = tpu.matmul %101, %1, %cst_44 {dimension_numbers = #tpu.dot_dimension_numbers<[1], [0], [0], [1], [0, 0, 1, 1], [], []>} : vector<16x32xf32>, vector<32x16xf32>, vector<16x16xf32> -> vector<16x16xf32>
    %cst_45 = arith.constant 1.17707801 : f32
    %103 = vector.broadcast %cst_45 : f32 to vector<16x16xf32>
    %104 = arith.mulf %103, %95 : vector<16x16xf32>
    %cst_46 = arith.constant 0.460353076 : f32
    %105 = vector.broadcast %cst_46 : f32 to vector<16x16xf32>
    %106 = arith.mulf %105, %102 : vector<16x16xf32>
    %107 = arith.subf %104, %106 : vector<16x16xf32>
    %108 = vector.extract_strided_slice %3 {offsets = [3, 0], sizes = [1, 16], strides = [1, 1]} : vector<8x16xf32> to vector<1x16xf32>
    %109 = vector.broadcast %108 : vector<1x16xf32> to vector<16x16xf32>
    %110 = arith.addf %107, %109 : vector<16x16xf32>
    %c2 = arith.constant 2 : index
    %c0_47 = arith.constant 0 : index
    %c0_48 = arith.constant 0 : index
    %111 = vector.load %arg2[%c2, %c0_47, %c0_48] : memref<7x16x16xf32, #tpu.memory_space<vmem>>, vector<1x16x16xf32>
    %112 = vector.shape_cast %111 : vector<1x16x16xf32> to vector<16x16xf32>
    %cst_49 = arith.constant 0.208319306 : f32
    %113 = vector.broadcast %cst_49 : f32 to vector<16x16xf32>
    %114 = arith.mulf %113, %112 : vector<16x16xf32>
    %115 = arith.addf %110, %114 : vector<16x16xf32>
    %116 = arith.select %9, %4, %115 : vector<16x16xi1>, vector<16x16xf32>
    %cst_50 = arith.constant dense<0.000000e+00> : vector<16x32xf32>
    %117 = tpu.matmul %116, %0, %cst_50 {dimension_numbers = #tpu.dot_dimension_numbers<[1], [0], [0], [1], [0, 0, 1, 1], [], []>} : vector<16x16xf32>, vector<16x32xf32>, vector<16x32xf32> -> vector<16x32xf32>
    %118 = vector.extract_strided_slice %2 {offsets = [2, 0], sizes = [1, 32], strides = [1, 1]} : vector<8x32xf32> to vector<1x32xf32>
    %119 = vector.broadcast %118 : vector<1x32xf32> to vector<16x32xf32>
    %120 = arith.addf %117, %119 : vector<16x32xf32>
    %cst_51 = arith.constant 0.000000e+00 : f32
    %121 = vector.broadcast %cst_51 : f32 to vector<16x32xf32>
    %122 = arith.maximumf %120, %121 : vector<16x32xf32>
    %cst_52 = arith.constant dense<0.000000e+00> : vector<16x16xf32>
    %123 = tpu.matmul %122, %1, %cst_52 {dimension_numbers = #tpu.dot_dimension_numbers<[1], [0], [0], [1], [0, 0, 1, 1], [], []>} : vector<16x32xf32>, vector<32x16xf32>, vector<16x16xf32> -> vector<16x16xf32>
    %cst_53 = arith.constant 1.11261487 : f32
    %124 = vector.broadcast %cst_53 : f32 to vector<16x16xf32>
    %125 = arith.mulf %124, %116 : vector<16x16xf32>
    %cst_54 = arith.constant 0.380525172 : f32
    %126 = vector.broadcast %cst_54 : f32 to vector<16x16xf32>
    %127 = arith.mulf %126, %123 : vector<16x16xf32>
    %128 = arith.subf %125, %127 : vector<16x16xf32>
    %129 = vector.extract_strided_slice %3 {offsets = [2, 0], sizes = [1, 16], strides = [1, 1]} : vector<8x16xf32> to vector<1x16xf32>
    %130 = vector.broadcast %129 : vector<1x16xf32> to vector<16x16xf32>
    %131 = arith.addf %128, %130 : vector<16x16xf32>
    %c1 = arith.constant 1 : index
    %c0_55 = arith.constant 0 : index
    %c0_56 = arith.constant 0 : index
    %132 = vector.load %arg2[%c1, %c0_55, %c0_56] : memref<7x16x16xf32, #tpu.memory_space<vmem>>, vector<1x16x16xf32>
    %133 = vector.shape_cast %132 : vector<1x16x16xf32> to vector<16x16xf32>
    %cst_57 = arith.constant 0.152571648 : f32
    %134 = vector.broadcast %cst_57 : f32 to vector<16x16xf32>
    %135 = arith.mulf %134, %133 : vector<16x16xf32>
    %136 = arith.addf %131, %135 : vector<16x16xf32>
    %137 = arith.select %9, %4, %136 : vector<16x16xi1>, vector<16x16xf32>
    %cst_58 = arith.constant dense<0.000000e+00> : vector<16x32xf32>
    %138 = tpu.matmul %137, %0, %cst_58 {dimension_numbers = #tpu.dot_dimension_numbers<[1], [0], [0], [1], [0, 0, 1, 1], [], []>} : vector<16x16xf32>, vector<16x32xf32>, vector<16x32xf32> -> vector<16x32xf32>
    %139 = vector.extract_strided_slice %2 {offsets = [1, 0], sizes = [1, 32], strides = [1, 1]} : vector<8x32xf32> to vector<1x32xf32>
    %140 = vector.broadcast %139 : vector<1x32xf32> to vector<16x32xf32>
    %141 = arith.addf %138, %140 : vector<16x32xf32>
    %cst_59 = arith.constant 0.000000e+00 : f32
    %142 = vector.broadcast %cst_59 : f32 to vector<16x32xf32>
    %143 = arith.maximumf %141, %142 : vector<16x32xf32>
    %cst_60 = arith.constant dense<0.000000e+00> : vector<16x16xf32>
    %144 = tpu.matmul %143, %1, %cst_60 {dimension_numbers = #tpu.dot_dimension_numbers<[1], [0], [0], [1], [0, 0, 1, 1], [], []>} : vector<16x32xf32>, vector<32x16xf32>, vector<16x16xf32> -> vector<16x16xf32>
    %cst_61 = arith.constant 1.06339264 : f32
    %145 = vector.broadcast %cst_61 : f32 to vector<16x16xf32>
    %146 = arith.mulf %145, %137 : vector<16x16xf32>
    %cst_62 = arith.constant 0.314483851 : f32
    %147 = vector.broadcast %cst_62 : f32 to vector<16x16xf32>
    %148 = arith.mulf %147, %144 : vector<16x16xf32>
    %149 = arith.subf %146, %148 : vector<16x16xf32>
    %150 = vector.extract_strided_slice %3 {offsets = [1, 0], sizes = [1, 16], strides = [1, 1]} : vector<8x16xf32> to vector<1x16xf32>
    %151 = vector.broadcast %150 : vector<1x16xf32> to vector<16x16xf32>
    %152 = arith.addf %149, %151 : vector<16x16xf32>
    %c0_63 = arith.constant 0 : index
    %c0_64 = arith.constant 0 : index
    %c0_65 = arith.constant 0 : index
    %153 = vector.load %arg2[%c0_63, %c0_64, %c0_65] : memref<7x16x16xf32, #tpu.memory_space<vmem>>, vector<1x16x16xf32>
    %154 = vector.shape_cast %153 : vector<1x16x16xf32> to vector<16x16xf32>
    %cst_66 = arith.constant 0.0893080756 : f32
    %155 = vector.broadcast %cst_66 : f32 to vector<16x16xf32>
    %156 = arith.mulf %155, %154 : vector<16x16xf32>
    %157 = arith.addf %152, %156 : vector<16x16xf32>
    %158 = arith.select %9, %4, %157 : vector<16x16xi1>, vector<16x16xf32>
    %cst_67 = arith.constant dense<0.000000e+00> : vector<16x32xf32>
    %159 = tpu.matmul %158, %0, %cst_67 {dimension_numbers = #tpu.dot_dimension_numbers<[1], [0], [0], [1], [0, 0, 1, 1], [], []>} : vector<16x16xf32>, vector<16x32xf32>, vector<16x32xf32> -> vector<16x32xf32>
    %160 = vector.extract_strided_slice %2 {offsets = [0, 0], sizes = [1, 32], strides = [1, 1]} : vector<8x32xf32> to vector<1x32xf32>
    %161 = vector.broadcast %160 : vector<1x32xf32> to vector<16x32xf32>
    %162 = arith.addf %159, %161 : vector<16x32xf32>
    %cst_68 = arith.constant 0.000000e+00 : f32
    %163 = vector.broadcast %cst_68 : f32 to vector<16x32xf32>
    %164 = arith.maximumf %162, %163 : vector<16x32xf32>
    %cst_69 = arith.constant dense<0.000000e+00> : vector<16x16xf32>
    %165 = tpu.matmul %164, %1, %cst_69 {dimension_numbers = #tpu.dot_dimension_numbers<[1], [0], [0], [1], [0, 0, 1, 1], [], []>} : vector<16x32xf32>, vector<32x16xf32>, vector<16x16xf32> -> vector<16x16xf32>
    %cst_70 = arith.constant 1.02178979 : f32
    %166 = vector.broadcast %cst_70 : f32 to vector<16x16xf32>
    %167 = arith.mulf %166, %158 : vector<16x16xf32>
    %cst_71 = arith.constant 0.209891155 : f32
    %168 = vector.broadcast %cst_71 : f32 to vector<16x16xf32>
    %169 = arith.mulf %168, %165 : vector<16x16xf32>
    %170 = arith.subf %167, %169 : vector<16x16xf32>
    %171 = vector.extract_strided_slice %3 {offsets = [0, 0], sizes = [1, 16], strides = [1, 1]} : vector<8x16xf32> to vector<1x16xf32>
    %172 = vector.broadcast %171 : vector<1x16xf32> to vector<16x16xf32>
    %173 = arith.addf %170, %172 : vector<16x16xf32>
    %174 = arith.select %9, %4, %173 : vector<16x16xi1>, vector<16x16xf32>
    %c0_72 = arith.constant 0 : index
    %c0_73 = arith.constant 0 : index
    %175 = vector.load %arg7[%c0_72, %c0_73] : memref<16x16xf32, #tpu.memory_space<vmem>>, vector<16x16xf32>
    tpu.vector_store %arg7[%c0_72, %c0_73], %174 {strides = array<i32>} : memref<16x16xf32, #tpu.memory_space<vmem>>, vector<16x16xf32>,
    return
  }
}

</mosaic_0001>

<bundles_post_ra>
// kernel: tpu_custom_call.1
= control target key start
LH: loop header
LB: loop body
LE: loop exit
PB: predicated region body
PF: predicated region fallthrough
CT: control target
= control target key end

     0   :  { %12 = vsyncpa [#allocation3], 0  ;;  %s1118_s0 = inlined_call_operand.vmem [shape: f32[16,16], index: 0, kind: input, shape index: {}]   ;;  %s1119_s1 = inlined_call_operand.vmem [shape: f32[16,16], index: 1, kind: input, shape index: {}]   ;;  %s1120_s2 = inlined_call_operand.hbm [shape: f32[7,16,16], index: 2, kind: input, shape index: {}]   ;;  %s1121_s3 = inlined_call_operand.hbm [shape: f32[8,32], index: 3, kind: input, shape index: {}]   ;;  %s1122_s4 = inlined_call_operand.hbm [shape: f32[8,16], index: 4, kind: input, shape index: {}]   ;;  %s1123_s5 = inlined_call_operand.vmem [shape: f32[16,32], index: 5, kind: input, shape index: {}]   ;;  %s1124_s6 = inlined_call_operand.vmem [shape: f32[32,16], index: 6, kind: input, shape index: {}]   ;;  %s1125_s7 = inlined_call_operand.hbm [shape: f32[16,16], index: 7, kind: output, shape index: {}]  }
   0x1   :  { %13 = vsyncpa [#allocation6], 0  ;;  %s37_s26 = sshll.u32 %s1121_s3, 4  ;;  %s38_s26 = int_to_ptr.hbm [resolvable:$true] %s37_s26 }
   0x2   :  { %14 = vsyncpa [#allocation4], 0  ;;  %s881_s27 = smov [#allocation5]   ;;  %s23_s8 = sshll.u32 %s1120_s2, 4  ;;  %s24_s8 = int_to_ptr.hbm [resolvable:$true] %s23_s8 }
   0x3   :  { %s39_s28 = sshll.u32 %s881_s27, 4  ;;  %s882_s9 = smov [#allocation2]   ;;  %s40_s28 = int_to_ptr.vmem [resolvable:$true] %s39_s28 }
   0x4   :  { %42 = dma.hbm_to_vmem [thread:$0]  %s38_s26, 128, %s40_s28, [#allocation6]  }
   0x5   :  { %s25_s10 = sshll.u32 %s882_s9, 4  ;;  %s883_s11 = smov 128   ;;  %s26_s10 = int_to_ptr.vmem [resolvable:$true] %s25_s10 }
   0x6   :  { %s884_s12 = smov 8   ;;  %s48_s14 = sshll.u32 %s1122_s4, 4  ;;  %s49_s14 = int_to_ptr.hbm [resolvable:$true] %s48_s14 }
   0x7   :  { %31 = dma.hbm_to_vmem [thread:$0]  %s24_s8, 1792, %s26_s10, [#allocation3], %s883_s11, %s883_s11, %s884_s12  }
   0x8   :  { %s885_s15 = smov [#allocation7]  }
   0x9   :  { %s50_s16 = sshll.u32 %s885_s15, 4  ;;  %s51_s16 = int_to_ptr.vmem [resolvable:$true] %s50_s16 }
   0xa   :  { %53 = dma.hbm_to_vmem [thread:$0]  %s49_s14, 128, %s51_s16, [#allocation6]  }
   0xb   :  { %875 = dma.done.wait [#allocation3], 1792  }
   0xc   :  { %876 = vsyncadd [#allocation3], 4294965504 }
   0xd   :  { %877 = dma.done.wait [#allocation6], 256  }
   0xe   :  { %878 = vsyncadd [#allocation6], 4294967040  ;;  %v80_v0 = vlaneseq  ;;  %v945_v2 = vld [vmem:[%s1123_s5 + $0x8] sm:$0xff]  ;;  %v950_v3 = vld [vmem:[%s1123_s5] sm:$0xff]  ;;  %vm94_vm1 = vcmask 130048   ;;  %vm126_vm2 = vcmask 261120  }
   0xf   :  { %v955_v4 = vld [vmem:[%s1118_s0] sm:$0xff]  ;;  %115 = vmatpush.msra.mxu0 %v945_v2  ;;  %v964_v6 = vld [vmem:[%s1124_s6 + $0x18] sm:$0xff]  ;;  %195 = vmatpush.msra.mxu2 %v945_v2  ;;  %v90_v8 = vld [vmem:[%s1119_s1 + $0x8] sm:$0xff]  ;;  %s727_s10 = sshll.u32 %s1125_s7, 4  ;;  %s728_s10 = int_to_ptr.hbm [resolvable:$true] %s727_s10 }
  0x10   :  { %v939_v1 = vshrl.u32 %v80_v0, 7  ;;  %v89_v5 = vld [vmem:[%s1119_s1] sm:$0xff]  ;;  %145 = vmatpush.msra.mxu1 %v964_v6  ;;  %224 = vmatpush.msra.mxu3 %v964_v6  ;;  %v987_v9 = vld [vmem:[%s1124_s6 + $0x10] sm:$0xff]  ;;  %v994_v10 = vld [vmem:[%s1124_s6 + $0x8] sm:$0xff]  ;;  %v157_v29 = vmul.f32 31.622776, %v90_v8 }
  0x11   :  { %116 = vmatpush.msra.mxu0 %v950_v3  ;;  %196 = vmatpush.msra.mxu2 %v950_v3  ;;  %v1002_v11 = vld [vmem:[%s1124_s6] sm:$0xff]  ;;  %v1014_v12 = vld [vmem:[#allocation5] sm:$0xff]  ;;  %v1021_v20 = vld [vmem:[#allocation7] sm:$0xff]  ;;  %s886_s6 = smov [#allocation8]  }
  0x12   :  { %vm83_vm0 = vcmp.lt.s32.totalorder %v939_v1, 2  ;;  %146 = vmatpush.msra.mxu1 %v987_v9  ;;  %225 = vmatpush.msra.mxu3 %v987_v9  ;;  %v93_v13 = vperm.slane %v1014_v12, 7  ;;  %v166_v23 = vld [vmem:[#allocation2 + $0x60] sm:$0xff]  ;;  %v162_v25 = vperm.slane %v1021_v20, 7  ;;  %v167_v32 = vld [vmem:[#allocation2 + $0x68] sm:$0xff]  ;;  %v174_v39 = vperm.slane %v1014_v12, 6 }
  0x13   :  { %v91_v7 = vsel %vm83_vm0, %v955_v4, %v89_v5  ;;  %303 = vmatpush.msrb.mxu2 %v964_v6  ;;  %274 = vmatpush.msrb.mxu0 %v945_v2  ;;  %v168_v27 = vmul.f32 0.49030644, %v166_v23  ;;  %v169_v36 = vmul.f32 0.49030644, %v167_v32  ;;  %v245_v47 = vld [vmem:[#allocation2 + $0x50] sm:$0xff]  ;;  %v241_v50 = vperm.slane %v1021_v20, 6 }
  0x14   :  { %741 = vmatmul.msk.f32.vlgmr.msra.gmra.mxu0 %vm94_vm1, %v91_v7  ;;  %147 = vmatpush.msra.mxu1 %v994_v10  ;;  %v156_v21 = vmul.f32 31.622776, %v91_v7  ;;  %v247_v52 = vmul.f32 0.40562612, %v245_v47  ;;  %v246_v56 = vld [vmem:[#allocation2 + $0x58] sm:$0xff]  ;;  %v253_v0 = vperm.slane %v1014_v12, 5 }
  0x15   :  { %275 = vmatpush.msrb.mxu0 %v950_v3  ;;  %304 = vmatpush.msrb.mxu2 %v987_v9  ;;  %v248_v61 = vmul.f32 0.40562612, %v246_v56  ;;  %s725_s30 = sshll.u32 %s886_s6, 4  ;;  %s726_s30 = int_to_ptr.vmem [resolvable:$true] %s725_s30 }
  0x16   :  { %226 = vmatpush.msra.mxu3 %v994_v10  ;;  %148 = vmatpush.msra.mxu1 %v1002_v11 }
  0x17   :  { %432 = vmatpush.msra.mxu0 %v945_v2  ;;  %305 = vmatpush.msrb.mxu2 %v994_v10 }
  0x18   :  { %227 = vmatpush.msra.mxu3 %v1002_v11  ;;  %353 = vmatpush.msrb.mxu1 %v945_v2 }
  0x19   :  { %433 = vmatpush.msra.mxu0 %v950_v3  ;;  %306 = vmatpush.msrb.mxu2 %v1002_v11 }
  0x1a   :  { %382 = vmatpush.msrb.mxu3 %v964_v6  ;;  %354 = vmatpush.msrb.mxu1 %v950_v3 }
  0x1c   :  { %742 = vmatmul.msk.f32.gmra.mxu0 %vm94_vm1, %v90_v8  ;;  %383 = vmatpush.msrb.mxu3 %v987_v9 }
  0x1e   :  { %384 = vmatpush.msrb.mxu3 %v994_v10 }
  0x20   :  { %385 = vmatpush.msrb.mxu3 %v1002_v11 }
  0x91   :  { %v118_v14 = vpop.f32.mrf.mxu0 }
  0x92   :  { %v119_v15 = vadd.f32 %v118_v14, %v93_v13 }
  0x94   :  { %v124_v16 = vmax.f32 %v119_v15, 0.0 }
  0x96   :  { %743 = vmatmul.msk.f32.vlgmr.msra.gmra.mxu1 %vm126_vm2, %v124_v16 }
  0x97   :  { %511 = vmatpush.msra.mxu1 %v945_v2 }
  0x99   :  { %v121_v17 = vpop.f32.mrf.mxu0  ;;  %512 = vmatpush.msra.mxu1 %v950_v3 }
  0x9a   :  { %v122_v18 = vadd.f32 %v121_v17, %v93_v13  ;;  %v324_v17 = vld [vmem:[#allocation2 + $0x40] sm:$0xff] }
  0x9b   :  { %v326_v23 = vmul.f32 0.32695758, %v324_v17 }
  0x9c   :  { %v125_v19 = vmax.f32 %v122_v18, 0.0 }
  0x9e   :  { %744 = vmatmul.msk.f32.gmra.mxu1 %vm126_vm2, %v125_v19 }
 0x113   :  { %v150_v22 = vpop.f32.mrf.mxu1 }
 0x114   :  { %v158_v24 = vmul.f32 31.591745, %v150_v22 }
 0x116   :  { %v160_v26 = vsub.f32 %v156_v21, %v158_v24  ;;  %v320_v21 = vperm.slane %v1021_v20, 5 }
 0x118   :  { %v163_v28 = vadd.f32 %v162_v25, %v160_v26 }
 0x11a   :  { %v170_v30 = vadd.f32 %v168_v27, %v163_v28  ;;  %v325_v27 = vld [vmem:[#allocation2 + $0x48] sm:$0xff] }
 0x11b   :  { %v153_v31 = vpop.f32.mrf.mxu1  ;;  %v327_v32 = vmul.f32 0.32695758, %v325_v27 }
 0x11c   :  { %v159_v33 = vmul.f32 31.591745, %v153_v31  ;;  %v172_v34 = vsel %vm83_vm0, %v955_v4, %v170_v30 }
 0x11d   :  { %745 = vmatmul.msk.f32.vlgmr.msra.gmra.mxu2 %vm94_vm1, %v172_v34  ;;  %v235_v48 = vmul.f32 1.9621762, %v172_v34 }
 0x11e   :  { %v161_v35 = vsub.f32 %v157_v29, %v159_v33  ;;  %461 = vmatpush.msra.mxu2 %v964_v6 }
 0x120   :  { %v164_v37 = vadd.f32 %v162_v25, %v161_v35  ;;  %462 = vmatpush.msra.mxu2 %v987_v9  ;;  %v332_v35 = vperm.slane %v1014_v12, 4 }
 0x122   :  { %v171_v38 = vadd.f32 %v169_v36, %v164_v37  ;;  %463 = vmatpush.msra.mxu2 %v994_v10 }
 0x124   :  { %464 = vmatpush.msra.mxu2 %v1002_v11  ;;  %v236_v57 = vmul.f32 1.9621762, %v171_v38 }
 0x125   :  { %746 = vmatmul.msk.f32.gmra.mxu2 %vm94_vm1, %v171_v38 }
 0x1a0   :  { %v198_v40 = vpop.f32.mrf.mxu2 }
 0x1a1   :  { %v199_v41 = vadd.f32 %v198_v40, %v174_v39 }
 0x1a3   :  { %v204_v42 = vmax.f32 %v199_v41, 0.0  ;;  %v403_v41 = vld [vmem:[#allocation2 + $0x30] sm:$0xff] }
 0x1a5   :  { %747 = vmatmul.msk.f32.vlgmr.msra.gmra.mxu3 %vm126_vm2, %v204_v42 }
 0x1a6   :  { %540 = vmatpush.msra.mxu3 %v964_v6 }
 0x1a8   :  { %v201_v43 = vpop.f32.mrf.mxu2  ;;  %541 = vmatpush.msra.mxu3 %v987_v9 }
 0x1a9   :  { %v202_v44 = vadd.f32 %v201_v43, %v174_v39 }
 0x1aa   :  { %542 = vmatpush.msra.mxu3 %v994_v10 }
 0x1ab   :  { %v205_v45 = vmax.f32 %v202_v44, 0.0  ;;  %v399_v44 = vperm.slane %v1021_v20, 4 }
 0x1ac   :  { %543 = vmatpush.msra.mxu3 %v1002_v11 }
 0x1ad   :  { %748 = vmatmul.msk.f32.gmra.mxu3 %vm126_vm2, %v205_v45 }
 0x228   :  { %v229_v46 = vpop.f32.mrf.mxu3 }
 0x229   :  { %v237_v49 = vmul.f32 1.4805422, %v229_v46  ;;  %v405_v46 = vmul.f32 0.26416916, %v403_v41 }
 0x22b   :  { %v239_v51 = vsub.f32 %v235_v48, %v237_v49 }
 0x22d   :  { %v242_v53 = vadd.f32 %v241_v50, %v239_v51 }
 0x22f   :  { %v249_v54 = vadd.f32 %v247_v52, %v242_v53 }
 0x230   :  { %v232_v55 = vpop.f32.mrf.mxu3 }
 0x231   :  { %v238_v58 = vmul.f32 1.4805422, %v232_v55  ;;  %v251_v59 = vsel %vm83_vm0, %v955_v4, %v249_v54  ;;  %v411_v54 = vperm.slane %v1014_v12, 3 }
 0x232   :  { %749 = vmatmul.msk.f32.vlgmr.msrb.gmra.mxu0 %vm94_vm1, %v251_v59  ;;  %v314_v18 = vmul.f32 1.452538, %v251_v59 }
 0x233   :  { %v240_v60 = vsub.f32 %v236_v57, %v238_v58  ;;  %590 = vmatpush.msrb.mxu0 %v945_v2 }
 0x235   :  { %v243_v62 = vadd.f32 %v241_v50, %v240_v60  ;;  %591 = vmatpush.msrb.mxu0 %v950_v3 }
 0x237   :  { %v250_v63 = vadd.f32 %v248_v61, %v243_v62  ;;  %v482_v62 = vld [vmem:[#allocation2 + $0x20] sm:$0xff] }
 0x239   :  { %v315_v28 = vmul.f32 1.452538, %v250_v63 }
 0x23a   :  { %750 = vmatmul.msk.f32.gmra.mxu0 %vm94_vm1, %v250_v63 }
 0x2af   :  { %v277_v5 = vpop.f32.mrf.mxu0 }
 0x2b0   :  { %v278_v7 = vadd.f32 %v277_v5, %v253_v0  ;;  %v478_v5 = vperm.slane %v1021_v20, 3 }
 0x2b2   :  { %v283_v8 = vmax.f32 %v278_v7, 0.0 }
 0x2b4   :  { %751 = vmatmul.msk.f32.vlgmr.msrb.gmra.mxu2 %vm126_vm2, %v283_v8  ;;  %v484_v8 = vmul.f32 0.2083193, %v482_v62 }
 0x2b5   :  { %619 = vmatpush.msrb.mxu2 %v964_v6 }
 0x2b7   :  { %v280_v13 = vpop.f32.mrf.mxu0  ;;  %620 = vmatpush.msrb.mxu2 %v987_v9 }
 0x2b8   :  { %v281_v14 = vadd.f32 %v280_v13, %v253_v0 }
 0x2b9   :  { %621 = vmatpush.msrb.mxu2 %v994_v10 }
 0x2ba   :  { %v284_v15 = vmax.f32 %v281_v14, 0.0 }
 0x2bb   :  { %622 = vmatpush.msrb.mxu2 %v1002_v11 }
 0x2bc   :  { %752 = vmatmul.msk.f32.gmra.mxu2 %vm126_vm2, %v284_v15 }
 0x337   :  { %v308_v16 = vpop.f32.mrf.mxu2 }
 0x338   :  { %v316_v19 = vmul.f32 0.8259912, %v308_v16  ;;  %v483_v16 = vld [vmem:[#allocation2 + $0x28] sm:$0xff] }
 0x33a   :  { %v318_v22 = vsub.f32 %v314_v18, %v316_v19 }
 0x33c   :  { %v321_v24 = vadd.f32 %v320_v21, %v318_v22  ;;  %v485_v22 = vmul.f32 0.2083193, %v483_v16 }
 0x33e   :  { %v328_v25 = vadd.f32 %v326_v23, %v321_v24 }
 0x33f   :  { %v311_v26 = vpop.f32.mrf.mxu2 }
 0x340   :  { %v317_v29 = vmul.f32 0.8259912, %v311_v26  ;;  %v330_v30 = vsel %vm83_vm0, %v955_v4, %v328_v25  ;;  %v490_v25 = vperm.slane %v1014_v12, 2 }
 0x341   :  { %753 = vmatmul.msk.f32.vlgmr.msrb.gmra.mxu1 %vm94_vm1, %v330_v30  ;;  %v393_v42 = vmul.f32 1.2737261, %v330_v30 }
 0x342   :  { %v319_v31 = vsub.f32 %v315_v28, %v317_v29  ;;  %668 = vmatpush.msrb.mxu1 %v945_v2 }
 0x344   :  { %v322_v33 = vadd.f32 %v320_v21, %v319_v31  ;;  %669 = vmatpush.msrb.mxu1 %v950_v3 }
 0x346   :  { %v329_v34 = vadd.f32 %v327_v32, %v322_v33  ;;  %v561_v33 = vld [vmem:[#allocation2 + $0x10] sm:$0xff] }
 0x348   :  { %v394_v49 = vmul.f32 1.2737261, %v329_v34 }
 0x349   :  { %754 = vmatmul.msk.f32.gmra.mxu1 %vm94_vm1, %v329_v34 }
 0x3be   :  { %v356_v36 = vpop.f32.mrf.mxu1 }
 0x3bf   :  { %v357_v37 = vadd.f32 %v356_v36, %v332_v35  ;;  %v557_v36 = vperm.slane %v1021_v20, 2 }
 0x3c1   :  { %v362_v38 = vmax.f32 %v357_v37, 0.0 }
 0x3c3   :  { %755 = vmatmul.msk.f32.vlgmr.msrb.gmra.mxu3 %vm126_vm2, %v362_v38  ;;  %v563_v38 = vmul.f32 0.15257165, %v561_v33 }
 0x3c4   :  { %697 = vmatpush.msrb.mxu3 %v964_v6 }
 0x3c6   :  { %v359_v39 = vpop.f32.mrf.mxu1  ;;  %698 = vmatpush.msrb.mxu3 %v987_v9  ;;  %v404_v9 = vld [vmem:[#allocation2 + $0x38] sm:$0xff] }
 0x3c7   :  { %v360_v40 = vadd.f32 %v359_v39, %v332_v35  ;;  %v406_v51 = vmul.f32 0.26416916, %v404_v9 }
 0x3c8   :  { %699 = vmatpush.msrb.mxu3 %v994_v10 }
 0x3c9   :  { %v363_v2 = vmax.f32 %v360_v40, 0.0 }
 0x3ca   :  { %700 = vmatpush.msrb.mxu3 %v1002_v11 }
 0x3cb   :  { %756 = vmatmul.msk.f32.gmra.mxu3 %vm126_vm2, %v363_v2 }
 0x446   :  { %v387_v3 = vpop.f32.mrf.mxu3 }
 0x447   :  { %v395_v43 = vmul.f32 0.58586407, %v387_v3  ;;  %v562_v3 = vld [vmem:[#allocation2 + $0x18] sm:$0xff] }
 0x449   :  { %v397_v45 = vsub.f32 %v393_v42, %v395_v43 }
 0x44b   :  { %v400_v6 = vadd.f32 %v399_v44, %v397_v45  ;;  %v564_v45 = vmul.f32 0.15257165, %v562_v3 }
 0x44d   :  { %v407_v47 = vadd.f32 %v405_v46, %v400_v6 }
 0x44e   :  { %v390_v48 = vpop.f32.mrf.mxu3 }
 0x44f   :  { %v396_v50 = vmul.f32 0.58586407, %v390_v48  ;;  %v409_v10 = vsel %vm83_vm0, %v955_v4, %v407_v47  ;;  %v569_v47 = vperm.slane %v1014_v12, 1 }
 0x450   :  { %757 = vmatmul.msk.f32.vlgmr.msra.gmra.mxu0 %vm94_vm1, %v409_v10  ;;  %v472_v63 = vmul.f32 1.177078, %v409_v10 }
 0x451   :  { %v398_v11 = vsub.f32 %v394_v49, %v396_v50 }
 0x453   :  { %v401_v52 = vadd.f32 %v399_v44, %v398_v11 }
 0x455   :  { %v408_v53 = vadd.f32 %v406_v51, %v401_v52  ;;  %v639_v52 = vld [vmem:[#allocation2] sm:$0xff] }
 0x457   :  { %v473_v17 = vmul.f32 1.177078, %v408_v53 }
 0x458   :  { %758 = vmatmul.msk.f32.gmra.mxu0 %vm94_vm1, %v408_v53 }
 0x4cd   :  { %v435_v55 = vpop.f32.mrf.mxu0 }
 0x4ce   :  { %v436_v56 = vadd.f32 %v435_v55, %v411_v54  ;;  %v636_v55 = vperm.slane %v1021_v20, 1 }
 0x4d0   :  { %v441_v57 = vmax.f32 %v436_v56, 0.0 }
 0x4d2   :  { %759 = vmatmul.msk.f32.vlgmr.msra.gmra.mxu2 %vm126_vm2, %v441_v57  ;;  %v641_v57 = vmul.f32 0.089308076, %v639_v52 }
 0x4d5   :  { %v438_v58 = vpop.f32.mrf.mxu0 }
 0x4d6   :  { %v439_v59 = vadd.f32 %v438_v58, %v411_v54 }
 0x4d8   :  { %v442_v60 = vmax.f32 %v439_v59, 0.0 }
 0x4da   :  { %760 = vmatmul.msk.f32.gmra.mxu2 %vm126_vm2, %v442_v60 }
 0x555   :  { %v466_v61 = vpop.f32.mrf.mxu2 }
 0x556   :  { %v474_v0 = vmul.f32 0.46035308, %v466_v61  ;;  %v640_v61 = vld [vmem:[#allocation2 + $0x8] sm:$0xff] }
 0x558   :  { %v476_v7 = vsub.f32 %v472_v63, %v474_v0 }
 0x55a   :  { %v479_v13 = vadd.f32 %v478_v5, %v476_v7  ;;  %v642_v7 = vmul.f32 0.089308076, %v640_v61 }
 0x55c   :  { %v486_v14 = vadd.f32 %v484_v8, %v479_v13 }
 0x55d   :  { %v469_v15 = vpop.f32.mrf.mxu2 }
 0x55e   :  { %v475_v18 = vmul.f32 0.46035308, %v469_v15  ;;  %v488_v19 = vsel %vm83_vm0, %v955_v4, %v486_v14  ;;  %v647_v14 = vperm.slane %v1014_v12, 0 }
 0x55f   :  { %761 = vmatmul.msk.f32.vlgmr.msra.gmra.mxu1 %vm94_vm1, %v488_v19  ;;  %v551_v34 = vmul.f32 1.1126149, %v488_v19 }
 0x560   :  { %v477_v21 = vsub.f32 %v473_v17, %v475_v18 }
 0x562   :  { %v480_v23 = vadd.f32 %v478_v5, %v477_v21 }
 0x564   :  { %v487_v24 = vadd.f32 %v485_v22, %v480_v23 }
 0x566   :  { %v552_v41 = vmul.f32 1.1126149, %v487_v24 }
 0x567   :  { %762 = vmatmul.msk.f32.gmra.mxu1 %vm94_vm1, %v487_v24 }
 0x5dc   :  { %v514_v26 = vpop.f32.mrf.mxu1 }
 0x5dd   :  { %v515_v27 = vadd.f32 %v514_v26, %v490_v25 }
 0x5df   :  { %v520_v28 = vmax.f32 %v515_v27, 0.0 }
 0x5e1   :  { %763 = vmatmul.msk.f32.vlgmr.msra.gmra.mxu3 %vm126_vm2, %v520_v28 }
 0x5e4   :  { %v517_v29 = vpop.f32.mrf.mxu1 }
 0x5e5   :  { %v518_v30 = vadd.f32 %v517_v29, %v490_v25  ;;  %v714_v25 = vperm.slane %v1021_v20, 0 }
 0x5e7   :  { %v521_v31 = vmax.f32 %v518_v30, 0.0 }
 0x5e9   :  { %764 = vmatmul.msk.f32.gmra.mxu3 %vm126_vm2, %v521_v31 }
 0x664   :  { %v545_v32 = vpop.f32.mrf.mxu3 }
 0x665   :  { %v553_v35 = vmul.f32 0.38052517, %v545_v32 }
 0x667   :  { %v555_v37 = vsub.f32 %v551_v34, %v553_v35 }
 0x669   :  { %v558_v39 = vadd.f32 %v557_v36, %v555_v37 }
 0x66b   :  { %v565_v40 = vadd.f32 %v563_v38, %v558_v39 }
 0x66c   :  { %v548_v2 = vpop.f32.mrf.mxu3 }
 0x66d   :  { %v554_v42 = vmul.f32 0.38052517, %v548_v2  ;;  %v567_v43 = vsel %vm83_vm0, %v955_v4, %v565_v40 }
 0x66e   :  { %765 = vmatmul.msk.f32.vlgmr.msrb.gmra.mxu0 %vm94_vm1, %v567_v43  ;;  %v630_v53 = vmul.f32 1.0633926, %v567_v43 }
 0x66f   :  { %v556_v44 = vsub.f32 %v552_v41, %v554_v42 }
 0x671   :  { %v559_v46 = vadd.f32 %v557_v36, %v556_v44 }
 0x673   :  { %v566_v6 = vadd.f32 %v564_v45, %v559_v46 }
 0x675   :  { %v631_v62 = vmul.f32 1.0633926, %v566_v6 }
 0x676   :  { %766 = vmatmul.msk.f32.gmra.mxu0 %vm94_vm1, %v566_v6 }
 0x6eb   :  { %v593_v48 = vpop.f32.mrf.mxu0 }
 0x6ec   :  { %v594_v9 = vadd.f32 %v593_v48, %v569_v47 }
 0x6ee   :  { %v599_v49 = vmax.f32 %v594_v9, 0.0 }
 0x6f0   :  { %767 = vmatmul.msk.f32.vlgmr.msrb.gmra.mxu2 %vm126_vm2, %v599_v49 }
 0x6f3   :  { %v596_v50 = vpop.f32.mrf.mxu0 }
 0x6f4   :  { %v597_v10 = vadd.f32 %v596_v50, %v569_v47 }
 0x6f6   :  { %v600_v11 = vmax.f32 %v597_v10, 0.0 }
 0x6f8   :  { %768 = vmatmul.msk.f32.gmra.mxu2 %vm126_vm2, %v600_v11 }
 0x773   :  { %v624_v51 = vpop.f32.mrf.mxu2 }
 0x774   :  { %v632_v54 = vmul.f32 0.31448385, %v624_v51 }
 0x776   :  { %v634_v56 = vsub.f32 %v630_v53, %v632_v54 }
 0x778   :  { %v637_v58 = vadd.f32 %v636_v55, %v634_v56 }
 0x77a   :  { %v643_v59 = vadd.f32 %v641_v57, %v637_v58 }
 0x77b   :  { %v627_v60 = vpop.f32.mrf.mxu2 }
 0x77c   :  { %v633_v63 = vmul.f32 0.31448385, %v627_v60  ;;  %v645_v0 = vsel %vm83_vm0, %v955_v4, %v643_v59 }
 0x77d   :  { %769 = vmatmul.msk.f32.vlgmr.msrb.gmra.mxu1 %vm94_vm1, %v645_v0  ;;  %v708_v23 = vmul.f32 1.0217898, %v645_v0 }
 0x77e   :  { %v635_v5 = vsub.f32 %v631_v62, %v633_v63 }
 0x780   :  { %v638_v8 = vadd.f32 %v636_v55, %v635_v5 }
 0x782   :  { %v644_v13 = vadd.f32 %v642_v7, %v638_v8 }
 0x784   :  { %v709_v29 = vmul.f32 1.0217898, %v644_v13 }
 0x785   :  { %770 = vmatmul.msk.f32.gmra.mxu1 %vm94_vm1, %v644_v13 }
 0x7fa   :  { %v671_v15 = vpop.f32.mrf.mxu1 }
 0x7fb   :  { %v672_v16 = vadd.f32 %v671_v15, %v647_v14 }
 0x7fd   :  { %v677_v17 = vmax.f32 %v672_v16, 0.0 }
 0x7ff   :  { %771 = vmatmul.msk.f32.vlgmr.msrb.gmra.mxu3 %vm126_vm2, %v677_v17 }
 0x802   :  { %v674_v18 = vpop.f32.mrf.mxu1 }
 0x803   :  { %v675_v19 = vadd.f32 %v674_v18, %v647_v14 }
 0x805   :  { %v678_v21 = vmax.f32 %v675_v19, 0.0 }
 0x807   :  { %772 = vmatmul.msk.f32.gmra.mxu3 %vm126_vm2, %v678_v21 }
 0x882   :  { %v702_v22 = vpop.f32.mrf.mxu3 }
 0x883   :  { %v710_v24 = vmul.f32 0.20989116, %v702_v22 }
 0x885   :  { %v712_v26 = vsub.f32 %v708_v23, %v710_v24 }
 0x887   :  { %v715_v27 = vadd.f32 %v714_v25, %v712_v26 }
 0x889   :  { %v717_v12 = vsel %vm83_vm0, %v955_v4, %v715_v27 }
 0x88a   :  { %v705_v28 = vpop.f32.mrf.mxu3  ;;  %719 = vst.msk [vmem:[#allocation8] sm:$0xff] %vm94_vm1, %v717_v12 }
 0x88b   :  { %v711_v30 = vmul.f32 0.20989116, %v705_v28 }
 0x88d   :  { %v713_v31 = vsub.f32 %v709_v29, %v711_v30 }
 0x88f   :  { %v716_v32 = vadd.f32 %v714_v25, %v713_v31 }
 0x891   :  { %720 = vst.msk [vmem:[#allocation8 + $0x8] sm:$0xff] %vm94_vm1, %v716_v32 }
 0x892   :  { %733 = dma.vmem_to_hbm [thread:$0]  %s726_s30, 256, %s728_s10, [#allocation4], %s883_s11, %s883_s11, %s884_s12  }
 0x893   :  { %879 = dma.done.wait [#allocation4], 256  }
 0x894   :  { %880 = vsyncadd [#allocation4], 4294967040 }
 0x895   :  { %738 = vsyncpa [#allocation3], 1 }
 0x896   :  { %739 = vsyncpa [#allocation6], 1 }
 0x897   :  { %740 = vsyncpa [#allocation4], 1 }

</bundles_post_ra>
